<compile_context>
chip_gen: v5e
topology: v5e:2x2
jax: 0.10.0
libtpu: 0.0.40
codegen_flags: <defaults>
</compile_context>

<pallas_src>
import functools
from dataclasses import dataclass

import jax
import jax.numpy as jnp
from jax.experimental import pallas as pl
from jax.experimental.pallas import tpu as pltpu


# ----------------------------------------------------------------------------
# Synthetic stand-in for the PyTorch-side StaticData helper.
# ----------------------------------------------------------------------------
@dataclass
class StaticData:
    n_joints: int
    foot_indexes: tuple   # indices (within skeleton joints) of the feet
    n_channels: int = 4


def _largest_divisor(n: int, cap: int) -> int:
    """Largest divisor of n that is <= cap (so the batch grid has no partial blocks)."""
    for d in range(min(n, cap), 0, -1):
        if n % d == 0:
            return d
    return 1


# ----------------------------------------------------------------------------
# Pallas kernel: per-batch-block finite-difference foot velocity (denormalised,
# + root term), sharpened-sigmoid contact weights, product, partial-sum
# accumulation in SMEM, scalar finalize.
# ----------------------------------------------------------------------------
def _foot_contact_loss_kernel(*refs, use_global_position: bool,
                              use_velocity: bool, denom: float):
    if use_global_position:
        (foot_ref, fstd_ref, root_ref, rstd_ref, rmean_ref,
         label_ref, out_ref, acc_ref) = refs
    else:
        foot_ref, fstd_ref, label_ref, out_ref, acc_ref = refs
        root_ref = rstd_ref = rmean_ref = None

    @pl.when(pl.program_id(0) == 0)
    def _init():
        acc_ref[0] = 0.0

    sq_sum = None
    for c in range(3):  # unrolled at trace time: x / y / z coordinate
        local_c = foot_ref[:, c, :, :]                                  # [TB, F, T]
        # per-(coord,foot) mean cancels in the finite difference -> only std needed
        d_c = (local_c[:, :, 1:] - local_c[:, :, :-1]) * fstd_ref[c]    # [TB, F, T-1]
        if use_global_position:
            r_c = root_ref[:, c, :]                                     # [TB, T]
            if use_velocity:
                # diff(cumsum(v)) == v[1:]  ->  no cumsum / MXU matmul needed;
                # just the denormalised root velocity at frames 1..T-1.
                r_term = r_c[:, 1:] * rstd_ref[c] + rmean_ref[c]        # [TB, T-1]
            else:
                r_term = (r_c[:, 1:] - r_c[:, :-1]) * rstd_ref[c]       # [TB, T-1]
            d_c = d_c + r_term[:, None, :]                              # bcast over feet
        sq = d_c * d_c
        sq_sum = sq if sq_sum is None else sq_sum + sq

    # TODO(synk): if this loss is ever differentiated, add a small eps inside the
    # sqrt (infinite gradient at exactly-zero velocity).
    velo = jnp.sqrt(sq_sum)                                             # [TB, F, T-1]

    labels = label_ref[...]                                             # [TB, F, T]
    contact = jax.nn.sigmoid((labels[:, :, 1:] - 0.5) * (2.0 * 6.0))    # [TB, F, T-1]

    acc_ref[0] += jnp.sum(contact * velo)

    @pl.when(pl.program_id(0) == pl.num_programs(0) - 1)
    def _finalize():
        out_ref[0, 0] = acc_ref[0] / denom


# ----------------------------------------------------------------------------
# Module wrapper (minimal host-side massaging: one foot-joint gather, cheap
# slices for root/labels/statistics; no full-tensor transposes or broadcasts).
# ----------------------------------------------------------------------------
class FootContactUnsupervisedLoss:
    def __init__(self, motion_statics, normalisation_data, use_global_position, use_velocity):
        self.motion_statics = motion_statics
        self.normalisation_data = normalisation_data
        self.use_global_position = use_global_position
        self.use_velocity = use_velocity

    def __call__(self, motion):
        ms = self.motion_statics
        B, K, J_total, T = motion.shape
        F = len(ms.foot_indexes)
        foot_idx = jnp.asarray(ms.foot_indexes, dtype=jnp.int32)

        mean = self.normalisation_data["mean"].astype(jnp.float32)   # [1, K, J_total, 1]
        std = self.normalisation_data["std"].astype(jnp.float32)     # [1, K, J_total, 1]
        motion = motion.astype(jnp.float32)

        # TODO(synk): full quaternion forward kinematics of the skeleton has no
        # clean single-kernel Pallas equivalent; foot-joint feature channels
        # 0:3 are treated directly as local foot positions instead.
        foot_local = jnp.take(motion[:, 0:3, :, :], foot_idx, axis=2)   # [B, 3, F, T]
        fstd = jnp.take(std[0, 0:3, :, 0], foot_idx, axis=1)[:, :, None]  # [3, F, 1]
        labels = motion[:, 0, J_total - F:, :]                          # [B, F, T]

        TB = _largest_divisor(B, 32)     # batch block; keeps VMEM per step bounded
        nb = B // TB
        denom = float(B * F * (T - 1))

        in_arrays = [foot_local, fstd]
        in_specs = [
            pl.BlockSpec((TB, 3, F, T), lambda b: (b, 0, 0, 0)),
            pl.BlockSpec((3, F, 1), lambda b: (0, 0, 0)),
        ]
        if self.use_global_position:
            root_j = ms.n_joints                                        # global-position entry
            root_raw = motion[:, 0:3, root_j, :]                        # [B, 3, T] (NOT replicated per foot)
            rstd = std[0, 0:3, root_j, 0]                               # [3]  -> SMEM
            rmean = mean[0, 0:3, root_j, 0]                             # [3]  -> SMEM
            in_arrays += [root_raw, rstd, rmean]
            in_specs += [
                pl.BlockSpec((TB, 3, T), lambda b: (b, 0, 0)),
                pl.BlockSpec(memory_space=pltpu.MemorySpace.SMEM),
                pl.BlockSpec(memory_space=pltpu.MemorySpace.SMEM),
            ]
        in_arrays.append(labels)
        in_specs.append(pl.BlockSpec((TB, F, T), lambda b: (b, 0, 0)))

        kernel = functools.partial(
            _foot_contact_loss_kernel,
            use_global_position=self.use_global_position,
            use_velocity=self.use_velocity,
            denom=denom,
        )
        out = pl.pallas_call(
            kernel,
            out_shape=jax.ShapeDtypeStruct((1, 1), jnp.float32),
            grid=(nb,),
            in_specs=in_specs,
            out_specs=pl.BlockSpec(memory_space=pltpu.MemorySpace.SMEM),
            scratch_shapes=[pltpu.SMEM((1,), jnp.float32)],
            compiler_params=pltpu.CompilerParams(
                dimension_semantics=("arbitrary",)),
        )(*in_arrays)
        return out[0, 0]


# ----------------------------------------------------------------------------
# Pure-JAX reference (for a sanity check of the kernel).
# ----------------------------------------------------------------------------
def reference_loss(motion, ms, norm, use_global_position, use_velocity):
    mean = norm["mean"].astype(jnp.float32)
    std = norm["std"].astype(jnp.float32)
    motion = motion.astype(jnp.float32)
    B, K, J_total, T = motion.shape
    F = len(ms.foot_indexes)
    foot_idx = jnp.asarray(ms.foot_indexes, dtype=jnp.int32)

    pos = motion[:, 0:3] * std[:, 0:3] + mean[:, 0:3]                  # [B, 3, J_total, T]
    foot = jnp.take(pos, foot_idx, axis=2)                             # [B, 3, F, T]
    if use_global_position:
        root = pos[:, :, ms.n_joints, :]                               # [B, 3, T]
        if use_velocity:
            root = jnp.cumsum(root, axis=-1)
        foot = foot + root[:, :, None, :]
    diff = foot[..., 1:] - foot[..., :-1]                              # [B, 3, F, T-1]
    velo = jnp.sqrt(jnp.sum(diff * diff, axis=1))                      # [B, F, T-1]
    labels = motion[:, 0, J_total - F:, :]                             # [B, F, T]
    contact = jax.nn.sigmoid((labels[:, :, 1:] - 0.5) * 2.0 * 6.0)     # [B, F, T-1]
    return jnp.mean(contact * velo)


if __name__ == "__main__":
    B, K, n_joints, n_feet, T = 2, 4, 8, 2, 16
    use_global_position, use_velocity = True, True
    J_total = n_joints + 1 + n_feet                                    # joints + root-pos + contact labels

    ms = StaticData(n_joints=n_joints, foot_indexes=(3, 7), n_channels=K)

    key = jax.random.PRNGKey(0)
    k1, k2, k3 = jax.random.split(key, 3)
    motion = jax.random.normal(k1, (B, K, J_total, T), dtype=jnp.float32)
    mean = 0.1 * jax.random.normal(k2, (1, K, J_total, 1), dtype=jnp.float32)
    std = 0.5 + jnp.abs(jax.random.normal(k3, (1, K, J_total, 1), dtype=jnp.float32))
    normalisation_data = {"mean": mean, "std": std}

    loss_mod = FootContactUnsupervisedLoss(ms, normalisation_data,
                                           use_global_position, use_velocity)
    out = jax.block_until_ready(loss_mod(motion))
    ref = jax.block_until_ready(reference_loss(motion, ms, normalisation_data,
                                               use_global_position, use_velocity))

    assert abs(float(out) - float(ref)) <= 1e-3 * max(1.0, abs(float(ref))), (out, ref)
    print("KERNEL_OK")
</pallas_src>

<mosaic_0001>
module attributes {stable_mosaic.version = 11 : i64} {
  func.func @_foot_contact_loss_kernel(%arg0: i32, %arg1: memref<2x3x2x16xf32, #tpu.memory_space<vmem>>, %arg2: memref<3x2x1xf32, #tpu.memory_space<vmem>>, %arg3: memref<2x3x16xf32, #tpu.memory_space<vmem>>, %arg4: memref<3xf32, #tpu.memory_space<smem>>, %arg5: memref<3xf32, #tpu.memory_space<smem>>, %arg6: memref<2x2x16xf32, #tpu.memory_space<vmem>>, %arg7: memref<1x1xf32, #tpu.memory_space<smem>>, %arg8: memref<1xf32, #tpu.memory_space<smem>>) attributes {dimension_semantics = [#tpu.dimension_semantics<arbitrary>], iteration_bounds = array<i64: 1>, scalar_prefetch = 0 : i64, scratch_operands = 1 : i64, tpu.core_type = #tpu.core_type<tc>, window_params = [{transform_indices = @transform_0, window_bounds = array<i64: 2, 3, 2, 16>}, {pipeline_mode = #tpu.pipeline_mode<synchronous>, transform_indices = @transform_1, window_bounds = array<i64: 3, 2, 1>}, {transform_indices = @transform_2, window_bounds = array<i64: 2, 3, 16>}, {transform_indices = @transform_3, window_bounds = array<i64: 3>}, {transform_indices = @transform_4, window_bounds = array<i64: 3>}, {transform_indices = @transform_5, window_bounds = array<i64: 2, 2, 16>}, {transform_indices = @transform_6, window_bounds = array<i64: 1, 1>}]} {
    %c0_i32 = arith.constant 0 : i32
    %0 = arith.cmpi eq, %arg0, %c0_i32 : i32
    %1 = arith.extui %0 : i1 to i32
    %c0_i32_0 = arith.constant 0 : i32
    %2 = arith.cmpi ne, %1, %c0_i32_0 : i32
    scf.if %2 {
      %cst_44 = arith.constant 0.000000e+00 : f32
      %c0_45 = arith.constant 0 : index
      %97 = memref.load %arg8[%c0_45] : memref<1xf32, #tpu.memory_space<smem>>
      memref.store %cst_44, %arg8[%c0_45] : memref<1xf32, #tpu.memory_space<smem>>
    } else {
    }
    %c0 = arith.constant 0 : index
    %c0_1 = arith.constant 0 : index
    %c0_2 = arith.constant 0 : index
    %c0_3 = arith.constant 0 : index
    %3 = vector.load %arg1[%c0, %c0_1, %c0_2, %c0_3] : memref<2x3x2x16xf32, #tpu.memory_space<vmem>>, vector<2x1x2x16xf32>
    %4 = vector.shape_cast %3 : vector<2x1x2x16xf32> to vector<2x2x16xf32>
    %5 = vector.extract_strided_slice %4 {offsets = [0, 0, 1], sizes = [2, 2, 15], strides = [1, 1, 1]} : vector<2x2x16xf32> to vector<2x2x15xf32>
    %6 = vector.extract_strided_slice %4 {offsets = [0, 0, 0], sizes = [2, 2, 15], strides = [1, 1, 1]} : vector<2x2x16xf32> to vector<2x2x15xf32>
    %7 = arith.subf %5, %6 : vector<2x2x15xf32>
    %c0_4 = arith.constant 0 : index
    %c0_5 = arith.constant 0 : index
    %c0_6 = arith.constant 0 : index
    %8 = vector.load %arg2[%c0_4, %c0_5, %c0_6] : memref<3x2x1xf32, #tpu.memory_space<vmem>>, vector<1x2x1xf32>
    %9 = vector.shape_cast %8 : vector<1x2x1xf32> to vector<2x1xf32>
    %10 = vector.shape_cast %9 : vector<2x1xf32> to vector<1x2x1xf32>
    %11 = vector.broadcast %10 : vector<1x2x1xf32> to vector<2x2x15xf32>
    %12 = arith.mulf %7, %11 : vector<2x2x15xf32>
    %c0_7 = arith.constant 0 : index
    %c0_8 = arith.constant 0 : index
    %c0_9 = arith.constant 0 : index
    %13 = vector.load %arg3[%c0_7, %c0_8, %c0_9] : memref<2x3x16xf32, #tpu.memory_space<vmem>>, vector<2x1x16xf32>
    %14 = vector.shape_cast %13 : vector<2x1x16xf32> to vector<2x16xf32>
    %15 = vector.extract_strided_slice %14 {offsets = [0, 1], sizes = [2, 15], strides = [1, 1]} : vector<2x16xf32> to vector<2x15xf32>
    %c0_10 = arith.constant 0 : index
    %16 = memref.load %arg4[%c0_10] : memref<3xf32, #tpu.memory_space<smem>>
    %17 = vector.broadcast %16 : f32 to vector<2x15xf32>
    %18 = arith.mulf %15, %17 : vector<2x15xf32>
    %c0_11 = arith.constant 0 : index
    %19 = memref.load %arg5[%c0_11] : memref<3xf32, #tpu.memory_space<smem>>
    %20 = vector.broadcast %19 : f32 to vector<2x15xf32>
    %21 = arith.addf %18, %20 : vector<2x15xf32>
    %22 = vector.shape_cast %21 : vector<2x15xf32> to vector<2x1x15xf32>
    %23 = vector.broadcast %22 : vector<2x1x15xf32> to vector<2x2x15xf32>
    %24 = arith.addf %12, %23 : vector<2x2x15xf32>
    %25 = arith.mulf %24, %24 : vector<2x2x15xf32>
    %c0_12 = arith.constant 0 : index
    %c1 = arith.constant 1 : index
    %c0_13 = arith.constant 0 : index
    %c0_14 = arith.constant 0 : index
    %26 = vector.load %arg1[%c0_12, %c1, %c0_13, %c0_14] : memref<2x3x2x16xf32, #tpu.memory_space<vmem>>, vector<2x1x2x16xf32>
    %27 = vector.shape_cast %26 : vector<2x1x2x16xf32> to vector<2x2x16xf32>
    %28 = vector.extract_strided_slice %27 {offsets = [0, 0, 1], sizes = [2, 2, 15], strides = [1, 1, 1]} : vector<2x2x16xf32> to vector<2x2x15xf32>
    %29 = vector.extract_strided_slice %27 {offsets = [0, 0, 0], sizes = [2, 2, 15], strides = [1, 1, 1]} : vector<2x2x16xf32> to vector<2x2x15xf32>
    %30 = arith.subf %28, %29 : vector<2x2x15xf32>
    %c1_15 = arith.constant 1 : index
    %c0_16 = arith.constant 0 : index
    %c0_17 = arith.constant 0 : index
    %31 = vector.load %arg2[%c1_15, %c0_16, %c0_17] : memref<3x2x1xf32, #tpu.memory_space<vmem>>, vector<1x2x1xf32>
    %32 = vector.shape_cast %31 : vector<1x2x1xf32> to vector<2x1xf32>
    %33 = vector.shape_cast %32 : vector<2x1xf32> to vector<1x2x1xf32>
    %34 = vector.broadcast %33 : vector<1x2x1xf32> to vector<2x2x15xf32>
    %35 = arith.mulf %30, %34 : vector<2x2x15xf32>
    %c0_18 = arith.constant 0 : index
    %c1_19 = arith.constant 1 : index
    %c0_20 = arith.constant 0 : index
    %36 = vector.load %arg3[%c0_18, %c1_19, %c0_20] : memref<2x3x16xf32, #tpu.memory_space<vmem>>, vector<2x1x16xf32>
    %37 = vector.shape_cast %36 : vector<2x1x16xf32> to vector<2x16xf32>
    %38 = vector.extract_strided_slice %37 {offsets = [0, 1], sizes = [2, 15], strides = [1, 1]} : vector<2x16xf32> to vector<2x15xf32>
    %c1_21 = arith.constant 1 : index
    %39 = memref.load %arg4[%c1_21] : memref<3xf32, #tpu.memory_space<smem>>
    %40 = vector.broadcast %39 : f32 to vector<2x15xf32>
    %41 = arith.mulf %38, %40 : vector<2x15xf32>
    %c1_22 = arith.constant 1 : index
    %42 = memref.load %arg5[%c1_22] : memref<3xf32, #tpu.memory_space<smem>>
    %43 = vector.broadcast %42 : f32 to vector<2x15xf32>
    %44 = arith.addf %41, %43 : vector<2x15xf32>
    %45 = vector.shape_cast %44 : vector<2x15xf32> to vector<2x1x15xf32>
    %46 = vector.broadcast %45 : vector<2x1x15xf32> to vector<2x2x15xf32>
    %47 = arith.addf %35, %46 : vector<2x2x15xf32>
    %48 = arith.mulf %47, %47 : vector<2x2x15xf32>
    %49 = arith.addf %25, %48 : vector<2x2x15xf32>
    %c0_23 = arith.constant 0 : index
    %c2 = arith.constant 2 : index
    %c0_24 = arith.constant 0 : index
    %c0_25 = arith.constant 0 : index
    %50 = vector.load %arg1[%c0_23, %c2, %c0_24, %c0_25] : memref<2x3x2x16xf32, #tpu.memory_space<vmem>>, vector<2x1x2x16xf32>
    %51 = vector.shape_cast %50 : vector<2x1x2x16xf32> to vector<2x2x16xf32>
    %52 = vector.extract_strided_slice %51 {offsets = [0, 0, 1], sizes = [2, 2, 15], strides = [1, 1, 1]} : vector<2x2x16xf32> to vector<2x2x15xf32>
    %53 = vector.extract_strided_slice %51 {offsets = [0, 0, 0], sizes = [2, 2, 15], strides = [1, 1, 1]} : vector<2x2x16xf32> to vector<2x2x15xf32>
    %54 = arith.subf %52, %53 : vector<2x2x15xf32>
    %c2_26 = arith.constant 2 : index
    %c0_27 = arith.constant 0 : index
    %c0_28 = arith.constant 0 : index
    %55 = vector.load %arg2[%c2_26, %c0_27, %c0_28] : memref<3x2x1xf32, #tpu.memory_space<vmem>>, vector<1x2x1xf32>
    %56 = vector.shape_cast %55 : vector<1x2x1xf32> to vector<2x1xf32>
    %57 = vector.shape_cast %56 : vector<2x1xf32> to vector<1x2x1xf32>
    %58 = vector.broadcast %57 : vector<1x2x1xf32> to vector<2x2x15xf32>
    %59 = arith.mulf %54, %58 : vector<2x2x15xf32>
    %c0_29 = arith.constant 0 : index
    %c2_30 = arith.constant 2 : index
    %c0_31 = arith.constant 0 : index
    %60 = vector.load %arg3[%c0_29, %c2_30, %c0_31] : memref<2x3x16xf32, #tpu.memory_space<vmem>>, vector<2x1x16xf32>
    %61 = vector.shape_cast %60 : vector<2x1x16xf32> to vector<2x16xf32>
    %62 = vector.extract_strided_slice %61 {offsets = [0, 1], sizes = [2, 15], strides = [1, 1]} : vector<2x16xf32> to vector<2x15xf32>
    %c2_32 = arith.constant 2 : index
    %63 = memref.load %arg4[%c2_32] : memref<3xf32, #tpu.memory_space<smem>>
    %64 = vector.broadcast %63 : f32 to vector<2x15xf32>
    %65 = arith.mulf %62, %64 : vector<2x15xf32>
    %c2_33 = arith.constant 2 : index
    %66 = memref.load %arg5[%c2_33] : memref<3xf32, #tpu.memory_space<smem>>
    %67 = vector.broadcast %66 : f32 to vector<2x15xf32>
    %68 = arith.addf %65, %67 : vector<2x15xf32>
    %69 = vector.shape_cast %68 : vector<2x15xf32> to vector<2x1x15xf32>
    %70 = vector.broadcast %69 : vector<2x1x15xf32> to vector<2x2x15xf32>
    %71 = arith.addf %59, %70 : vector<2x2x15xf32>
    %72 = arith.mulf %71, %71 : vector<2x2x15xf32>
    %73 = arith.addf %49, %72 : vector<2x2x15xf32>
    %74 = math.sqrt %73 : vector<2x2x15xf32>
    %c0_34 = arith.constant 0 : index
    %c0_35 = arith.constant 0 : index
    %c0_36 = arith.constant 0 : index
    %75 = vector.load %arg6[%c0_34, %c0_35, %c0_36] : memref<2x2x16xf32, #tpu.memory_space<vmem>>, vector<2x2x16xf32>
    %76 = vector.extract_strided_slice %75 {offsets = [0, 0, 1], sizes = [2, 2, 15], strides = [1, 1, 1]} : vector<2x2x16xf32> to vector<2x2x15xf32>
    %cst = arith.constant 5.000000e-01 : f32
    %77 = vector.broadcast %cst : f32 to vector<2x2x15xf32>
    %78 = arith.subf %76, %77 : vector<2x2x15xf32>
    %cst_37 = arith.constant 1.200000e+01 : f32
    %79 = vector.broadcast %cst_37 : f32 to vector<2x2x15xf32>
    %80 = arith.mulf %78, %79 : vector<2x2x15xf32>
    %81 = arith.negf %80 : vector<2x2x15xf32>
    %82 = math.exp %81 : vector<2x2x15xf32>
    %cst_38 = arith.constant 1.000000e+00 : f32
    %83 = vector.broadcast %cst_38 : f32 to vector<2x2x15xf32>
    %84 = arith.addf %83, %82 : vector<2x2x15xf32>
    %85 = arith.divf %83, %84 : vector<2x2x15xf32>
    %c0_39 = arith.constant 0 : index
    %86 = memref.load %arg8[%c0_39] : memref<1xf32, #tpu.memory_space<smem>>
    %87 = arith.mulf %85, %74 : vector<2x2x15xf32>
    %88 = vector.shape_cast %87 : vector<2x2x15xf32> to vector<1x2x2x15xf32>
    %cst_40 = arith.constant dense<0.000000e+00> : vector<1xf32>
    %89 = vector.multi_reduction <add>, %88, %cst_40 [1, 2, 3] : vector<1x2x2x15xf32> to vector<1xf32>
    %90 = vector.shape_cast %89 : vector<1xf32> to vector<1x1x1x1xf32>
    %91 = vector.extract %90[0, 0, 0, 0] : f32 from vector<1x1x1x1xf32>
    %92 = arith.addf %86, %91 : f32
    %c0_41 = arith.constant 0 : index
    %93 = memref.load %arg8[%c0_41] : memref<1xf32, #tpu.memory_space<smem>>
    memref.store %92, %arg8[%c0_41] : memref<1xf32, #tpu.memory_space<smem>>
    %c0_i32_42 = arith.constant 0 : i32
    %94 = arith.cmpi eq, %arg0, %c0_i32_42 : i32
    %95 = arith.extui %94 : i1 to i32
    %c0_i32_43 = arith.constant 0 : i32
    %96 = arith.cmpi ne, %95, %c0_i32_43 : i32
    scf.if %96 {
      %c0_44 = arith.constant 0 : index
      %97 = memref.load %arg8[%c0_44] : memref<1xf32, #tpu.memory_space<smem>>
      %cst_45 = arith.constant 6.000000e+01 : f32
      %98 = arith.divf %97, %cst_45 : f32
      %c0_46 = arith.constant 0 : index
      %c0_47 = arith.constant 0 : index
      %99 = memref.load %arg7[%c0_46, %c0_47] : memref<1x1xf32, #tpu.memory_space<smem>>
      memref.store %98, %arg7[%c0_46, %c0_47] : memref<1x1xf32, #tpu.memory_space<smem>>
    } else {
    }
    return
  }
  func.func @transform_0(%arg0: i32) -> (i32, i32, i32, i32) {
    %c0_i32 = arith.constant 0 : i32
    %c0_i32_0 = arith.constant 0 : i32
    %c0_i32_1 = arith.constant 0 : i32
    %c0_i32_2 = arith.constant 0 : i32
    return %arg0, %c0_i32, %c0_i32_0, %c0_i32_1 : i32, i32, i32, i32
  }
  func.func @transform_1(%arg0: i32) -> (i32, i32, i32) {
    %c0_i32 = arith.constant 0 : i32
    %c0_i32_0 = arith.constant 0 : i32
    %c0_i32_1 = arith.constant 0 : i32
    %c0_i32_2 = arith.constant 0 : i32
    return %c0_i32, %c0_i32_0, %c0_i32_1 : i32, i32, i32
  }
  func.func @transform_2(%arg0: i32) -> (i32, i32, i32) {
    %c0_i32 = arith.constant 0 : i32
    %c0_i32_0 = arith.constant 0 : i32
    %c0_i32_1 = arith.constant 0 : i32
    return %arg0, %c0_i32, %c0_i32_0 : i32, i32, i32
  }
  func.func @transform_3(%arg0: i32) -> i32 {
    %c0_i32 = arith.constant 0 : i32
    %c0_i32_0 = arith.constant 0 : i32
    return %c0_i32 : i32
  }
  func.func @transform_4(%arg0: i32) -> i32 {
    %c0_i32 = arith.constant 0 : i32
    %c0_i32_0 = arith.constant 0 : i32
    return %c0_i32 : i32
  }
  func.func @transform_5(%arg0: i32) -> (i32, i32, i32) {
    %c0_i32 = arith.constant 0 : i32
    %c0_i32_0 = arith.constant 0 : i32
    %c0_i32_1 = arith.constant 0 : i32
    return %arg0, %c0_i32, %c0_i32_0 : i32, i32, i32
  }
  func.func @transform_6(%arg0: i32) -> (i32, i32) {
    %c0_i32 = arith.constant 0 : i32
    %c0_i32_0 = arith.constant 0 : i32
    %c0_i32_1 = arith.constant 0 : i32
    return %c0_i32, %c0_i32_0 : i32, i32
  }
}

</mosaic_0001>

<bundles_post_ra>
// kernel: tpu_custom_call.1
= control target key start
LH: loop header
LB: loop body
LE: loop exit
PB: predicated region body
PF: predicated region fallthrough
CT: control target
= control target key end

     0   :  { %11 = vsyncpa [#allocation5], 0  ;;  %s545_s0 = inlined_call_operand.vmem [shape: f32[2,3,2,16], index: 0, kind: input, shape index: {}]   ;;  %s546_s1 = inlined_call_operand.vmem [shape: f32[3,2,1], index: 1, kind: input, shape index: {}]   ;;  %s547_s2 = inlined_call_operand.vmem [shape: f32[2,3,16], index: 2, kind: input, shape index: {}]   ;;  %s548_s3 = inlined_call_operand.vmem [shape: f32[3], index: 3, kind: input, shape index: {}]   ;;  %s549_s4 = inlined_call_operand.vmem [shape: f32[3], index: 4, kind: input, shape index: {}]   ;;  %s550_s5 = inlined_call_operand.vmem [shape: f32[2,2,16], index: 5, kind: input, shape index: {}]   ;;  %s551_s6 = inlined_call_operand.hbm [shape: f32[1,1], index: 6, kind: output, shape index: {}]  }
   0x1   :  { %12 = vsyncpa [#allocation7], 0 }
   0x2   :  { %13 = vsyncpa [#allocation4], 0  ;;  %s25_s23 = sshll.u32 %s548_s3, 4  ;;  %s34_s26 = sshll.u32 %s549_s4, 4  ;;  %s26_s23 = int_to_ptr.vmem [resolvable:$true] %s25_s23  ;;  %s35_s26 = int_to_ptr.vmem [resolvable:$true] %s34_s26 }
   0x3   :  { %s381_s27 = smov [#allocation3]   ;;  %s382_s28 = smov [#allocation6]  }
   0x4   :  { %28 = dma.vmem_to_smem %s26_s23, 16, %s381_s27, [#allocation5]  }
   0x5   :  { %37 = dma.vmem_to_smem %s35_s26, 16, %s382_s28, [#allocation7]  }
   0x6   :  { %375 = dma.done.wait [#allocation5], 16  }
   0x7   :  { %376 = vsyncadd [#allocation5], 4294967280 }
   0x8   :  { %377 = dma.done.wait [#allocation7], 16  }
   0x9   :  { %378 = vsyncadd [#allocation7], 4294967280 }
   0xa   :  { %48 = sfence }
   0xb   :  { %v432_v0 = vld [vmem:[%s545_s0 + $0x2] sm:$0x3]  ;;  %v437_v1 = vld [vmem:[%s545_s0] sm:$0x3]  ;;  %s383_s4 = smov 1   ;;  %v384_v2 = vmov 0  }
   0xc   :  { %96 = vrot.lane.b32.xlu1 %v432_v0, %s383_s4  ;;  %59 = vrot.lane.b32.xlu0 %v437_v1, %s383_s4  ;;  %v67_v3 = vld [vmem:[%s546_s1] sm:$0x3]  ;;  %v447_v4 = vld [vmem:[%s545_s0 + $0x8] sm:$0x3]  ;;  %s301_s26 = sld [smem:[#allocation3 + $0x1]]  ;;  %vm250_vm12 = vcmask 115712  }
   0xd   :  { %323 = vset.pattern.permute.xlu2 %v384_v2  ;;  %324 = vset.pattern.permute.xlu0 %v384_v2  ;;  %v452_v5 = vld [vmem:[%s545_s0 + $0x6] sm:$0x3]  ;;  %v300_v6 = vld [vmem:[%s546_s1 + $0x2] sm:$0x3]  ;;  %v462_v7 = vld [vmem:[%s545_s0 + $0xa] sm:$0x3] }
   0xe   :  { %70 = vperm.xlu2 %323, %v67_v3   ;;  %v467_v8 = vld [vmem:[%s545_s0 + $0x4] sm:$0x3]  ;;  %v196_v10 = vld [vmem:[%s550_s5 + $0x2] sm:$0x3]  ;;  %v195_v11 = vld [vmem:[%s550_s5] sm:$0x3] }
   0xf   :  { %v305_v9 = vld [vmem:[%s546_s1 + $0x4] sm:$0x3]  ;;  %s77_s0 = sld [smem:[#allocation3]]  ;;  %v309_v12 = vadd.f32 -0.5, %v196_v10  ;;  %v308_v13 = vadd.f32 -0.5, %v195_v11  ;;  %s286_s17 = sshll.u32 %s551_s6, 4  ;;  %s287_s17 = int_to_ptr.hbm [resolvable:$true] %s286_s17 }
  0x10   :  { %s480_s27 = sld [smem:[#allocation6 + $0x1]]  ;;  %v113_v17 = vld [vmem:[%s547_s2 + $0x1] sm:$0x1]  ;;  %v75_v19 = vld [vmem:[%s547_s2] sm:$0x1]  ;;  %s387_s21 = smov [#allocation8]  }
  0x11   :  { %s482_s1 = sld [smem:[#allocation6]]  ;;  %v311_v14 = vmul.f32 -12.0, %v309_v12  ;;  %v310_v15 = vmul.f32 -12.0, %v308_v13  ;;  %v114_v24 = vld [vmem:[%s547_s2 + $0x5] sm:$0x1] }
  0x12   :  { %s484_s28 = sld [smem:[#allocation3 + $0x2]]  ;;  %v116_v18 = vstv %s301_s26  ;;  %v76_v25 = vld [vmem:[%s547_s2 + $0x4] sm:$0x1]  ;;  %v154_v33 = vld [vmem:[%s547_s2 + $0x6] sm:$0x1] }
  0x13   :  { %v205_v21 = vmul.f32 1.442695, %v311_v14  ;;  %v203_v26 = vmul.f32 1.442695, %v310_v15  ;;  %s498_s10 = sld [smem:[#allocation6 + $0x2]]  ;;  %v117_v27 = vmul.f32 %v116_v18, %v113_v17  ;;  %v118_v31 = vmul.f32 %v116_v18, %v114_v24 }
  0x14   :  { %98 = vrot.lane.b32.xlu1 %v447_v4, %s383_s4  ;;  %61 = vrot.lane.b32.xlu0 %v452_v5, %s383_s4  ;;  %v153_v39 = vld [vmem:[%s547_s2 + $0x2] sm:$0x1]  ;;  %s385_s2 = smov 127  }
  0x15   :  { %v78_v20 = vstv %s77_s0  ;;  %325 = vpow2.f32 %v205_v21 }
  0x16   :  { %108 = vperm.xlu2 %323, %v300_v6   ;;  %v120_v28 = vstv %s480_s27  ;;  %v79_v29 = vmul.f32 %v78_v20, %v75_v19  ;;  %v80_v32 = vmul.f32 %v78_v20, %v76_v25  ;;  %327 = vpow2.f32 %v203_v26 }
  0x17   :  { %v82_v30 = vstv %s482_s1  ;;  %v121_v35 = vadd.f32 %v120_v28, %v117_v27  ;;  %v122_v41 = vadd.f32 %v120_v28, %v118_v31 }
  0x18   :  { %v156_v34 = vstv %s484_s28  ;;  %v83_v37 = vadd.f32 %v82_v30, %v79_v29  ;;  %v84_v42 = vadd.f32 %v82_v30, %v80_v32 }
  0x19   :  { %v158_v45 = vmul.f32 %v156_v34, %v154_v33  ;;  %v160_v49 = vstv %s498_s10  ;;  %v157_v50 = vmul.f32 %v156_v34, %v153_v39  ;;  %v123_v52 = vperm.slane %v121_v35, 0 }
  0x1a   :  { %v85_v54 = vperm.slane %v83_v37, 0  ;;  %v124_v56 = vperm.slane %v122_v41, 0  ;;  %v86_v58 = vperm.slane %v84_v42, 0 }
  0x1b   :  { %v326_v46 = vpop.eup %325  ;;  %v162_v60 = vadd.f32 %v160_v49, %v158_v45  ;;  %v161_v62 = vadd.f32 %v160_v49, %v157_v50 }
  0x1c   :  { %138 = vrot.lane.b32.xlu1 %v462_v7, %s383_s4  ;;  %136 = vrot.lane.b32.xlu0 %v467_v8, %s383_s4  ;;  %v328_v51 = vpop.eup %327  ;;  %v514_v61 = vadd.f32 1.0, %v326_v46 }
  0x1d   :  { %v516_v63 = vadd.f32 1.0, %v328_v51  ;;  %v163_v10 = vperm.slane %v161_v62, 0 }
  0x1e   :  { %148 = vperm.xlu2 %323, %v305_v9   ;;  %329 = vrcp.f32 %v514_v61  ;;  %vm229_vm0 = vweird.f32 %v514_v61 }
  0x1f   :  { %331 = vrcp.f32 %v516_v63  ;;  %vm214_vm2 = vweird.f32 %v516_v63  ;;  %v220_v42 = vand.u32 2147483648, %v516_v63  ;;  %v218_v46 = vand.u32 2147483647, %v516_v63 }
  0x21   :  { %vm219_vm7 = vcmp.eq.f32.partialorder %v218_v46, 8.507059e+37 }
  0x24   :  { %v330_v21 = vpop.eup %329 }
  0x25   :  { %vm230_vm1 = vweird.f32 %v330_v21 }
  0x26   :  { %vm529_vm4 = vmor %vm229_vm0, %vm230_vm1 }
  0x68   :  { %v71_v16 = vpop.permute.xlu2 %70 }
  0x70   :  { %v109_v40 = vpop.permute.xlu2 %108 }
  0x78   :  { %v149_v14 = vpop.permute.xlu2 %148 }
  0x7e   :  { %v97_v22 = vpop.permute.xlu1 %96  ;;  %v60_v23 = vpop.permute.xlu0 %59 }
  0x7f   :  { %v102_v36 = vsub.f32 %v432_v0, %v97_v22  ;;  %v65_v38 = vsub.f32 %v437_v1, %v60_v23  ;;  %v332_v22 = vpop.eup %331 }
  0x80   :  { %v210_v28 = vmul.f32 %v332_v22, %v516_v63  ;;  %vm215_vm3 = vweird.f32 %v332_v22 }
  0x81   :  { %v111_v53 = vmul.f32 %v109_v40, %v102_v36  ;;  %v73_v55 = vmul.f32 %v71_v16, %v65_v38  ;;  %v235_v38 = vand.u32 2147483648, %v514_v61  ;;  %vm534_vm5 = vmor %vm214_vm2, %vm215_vm3 }
  0x82   :  { %v211_v30 = vsub.f32 1.0, %v210_v28 }
  0x83   :  { %v125_v0 = vadd.f32 %v123_v52, %v111_v53  ;;  %v87_v1 = vadd.f32 %v85_v54, %v73_v55  ;;  %v236_v50 = vor.u32 1.1754944e-38, %v235_v38  ;;  %v221_v53 = vor.u32 1.1754944e-38, %v220_v42 }
  0x84   :  { %v212_v35 = vmul.f32 %v332_v22, %v211_v30 }
  0x85   :  { %v127_v12 = vmul.f32 %v125_v0, %v125_v0  ;;  %v89_v13 = vmul.f32 %v87_v1, %v87_v1 }
  0x86   :  { %v99_v43 = vpop.permute.xlu1 %98  ;;  %v62_v44 = vpop.permute.xlu0 %61  ;;  %v213_v45 = vadd.f32 %v332_v22, %v212_v35 }
  0x87   :  { %v103_v47 = vsub.f32 %v447_v4, %v99_v43  ;;  %v66_v48 = vsub.f32 %v452_v5, %v62_v44  ;;  %v164_v4 = vperm.slane %v162_v60, 0  ;;  %v129_v23 = vadd.f32 %v127_v12, %v89_v13 }
  0x88   :  { %v217_v55 = vsel %vm534_vm5, %v332_v22, %v213_v45  ;;  %v386_v12 = vmov 60.0  }
  0x89   :  { %v112_v57 = vmul.f32 %v109_v40, %v103_v47  ;;  %v74_v59 = vmul.f32 %v71_v16, %v66_v48  ;;  %v233_v40 = vand.u32 2147483647, %v514_v61 }
  0x8b   :  { %v126_v2 = vadd.f32 %v124_v56, %v112_v57  ;;  %v88_v3 = vadd.f32 %v86_v58, %v74_v59  ;;  %vm234_vm6 = vcmp.eq.f32.partialorder %v233_v40, 8.507059e+37 }
  0x8d   :  { %v128_v15 = vmul.f32 %v126_v2, %v126_v2  ;;  %v90_v16 = vmul.f32 %v88_v3, %v88_v3 }
  0x8e   :  { %v139_v5 = vpop.permute.xlu1 %138  ;;  %v137_v6 = vpop.permute.xlu0 %136 }
  0x8f   :  { %v143_v9 = vsub.f32 %v462_v7, %v139_v5  ;;  %v142_v11 = vsub.f32 %v467_v8, %v137_v6  ;;  %v130_v24 = vadd.f32 %v128_v15, %v90_v16  ;;  %v225_v8 = vmul.f32 %v330_v21, %v514_v61 }
  0x90   :  { %v222_v61 = vsel %vm219_vm7, %v221_v53, %v217_v55 }
  0x91   :  { %v152_v17 = vmul.f32 %v149_v14, %v143_v9  ;;  %v151_v18 = vmul.f32 %v149_v14, %v142_v11  ;;  %v226_v29 = vsub.f32 1.0, %v225_v8 }
  0x93   :  { %v166_v19 = vadd.f32 %v164_v4, %v152_v17  ;;  %v165_v20 = vadd.f32 %v163_v10, %v151_v18  ;;  %v227_v32 = vmul.f32 %v330_v21, %v226_v29 }
  0x95   :  { %v168_v25 = vmul.f32 %v166_v19, %v166_v19  ;;  %v167_v7 = vmul.f32 %v165_v20, %v165_v20  ;;  %v228_v39 = vadd.f32 %v330_v21, %v227_v32 }
  0x97   :  { %v170_v26 = vadd.f32 %v168_v25, %v130_v24  ;;  %v169_v27 = vadd.f32 %v167_v7, %v129_v23  ;;  %v232_v51 = vsel %vm529_vm4, %v330_v21, %v228_v39 }
  0x98   :  { %v237_v58 = vsel %vm234_vm6, %v236_v50, %v232_v51 }
  0x99   :  { %333 = vrsqrt.f32 %v170_v26  ;;  %vm190_vm8 = vcmp.eq.f32.partialorder %v170_v26, inf  ;;  %v193_v59 = vand.u32 2147483648, %v170_v26  ;;  %vm192_vm9 = vcmp.eq.f32.partialorder %v170_v26, 0.0 }
  0x9a   :  { %335 = vrsqrt.f32 %v169_v27  ;;  %vm178_vm10 = vcmp.eq.f32.partialorder %v169_v27, inf  ;;  %v181_v63 = vand.u32 2147483648, %v169_v27  ;;  %vm180_vm11 = vcmp.eq.f32.partialorder %v169_v27, 0.0 }
  0x9b   :  { %337 = vrcp.f32 %v386_v12 }
  0x9f   :  { %v334_v31 = vpop.eup %333 }
  0xa0   :  { %v336_v33 = vpop.eup %335  ;;  %v184_v34 = vmul.f32 %v334_v31, %v170_v26 }
  0xa1   :  { %v172_v36 = vmul.f32 %v336_v33, %v169_v27  ;;  %v338_v13 = vpop.eup %337 }
  0xa2   :  { %v185_v37 = vmul.f32 %v334_v31, %v184_v34  ;;  %v271_v14 = vmul.f32 60.0, %v338_v13  ;;  %vm275_vm13 = vweird.f32 %v338_v13 }
  0xa3   :  { %v173_v41 = vmul.f32 %v336_v33, %v172_v36 }
  0xa4   :  { %v186_v43 = vmul.f32 0.5, %v185_v37  ;;  %v272_v15 = vsub.f32 1.0, %v271_v14 }
  0xa5   :  { %v174_v47 = vmul.f32 0.5, %v173_v41 }
  0xa6   :  { %v187_v49 = vsub.f32 1.5, %v186_v43  ;;  %v273_v19 = vmul.f32 %v338_v13, %v272_v15 }
  0xa7   :  { %v175_v52 = vsub.f32 1.5, %v174_v47 }
  0xa8   :  { %v188_v54 = vmul.f32 %v334_v31, %v187_v49  ;;  %v274_v22 = vadd.f32 %v338_v13, %v273_v19 }
  0xa9   :  { %v176_v56 = vmul.f32 %v336_v33, %v175_v52 }
  0xaa   :  { %v189_v57 = vmul.f32 %v188_v54, %v170_v26  ;;  %v276_v25 = vsel %vm275_vm13, %v338_v13, %v274_v22 }
  0xab   :  { %v177_v60 = vmul.f32 %v176_v56, %v169_v27 }
  0xac   :  { %v191_v62 = vsel %vm190_vm8, %v170_v26, %v189_v57 }
  0xad   :  { %v194_v0 = vsel %vm192_vm9, %v193_v59, %v191_v62  ;;  %v179_v1 = vsel %vm178_vm10, %v169_v27, %v177_v60 }
  0xae   :  { %v241_v2 = vmul.f32 %v237_v58, %v194_v0  ;;  %v182_v3 = vsel %vm180_vm11, %v181_v63, %v179_v1 }
  0xaf   :  { %v240_v4 = vmul.f32 %v222_v61, %v182_v3 }
  0xb0   :  { %246 = vrot.lane.b32.xlu1 %v241_v2, %s385_s2 }
  0xb1   :  { %244 = vrot.lane.b32.xlu0 %v240_v4, %s385_s2 }
 0x122   :  { %v247_v5 = vpop.permute.xlu1 %246 }
 0x123   :  { %v252_v6 = vsel %vm250_vm12, %v247_v5, 0.0  ;;  %v245_v9 = vpop.permute.xlu0 %244 }
 0x124   :  { %v251_v10 = vsel %vm250_vm12, %v245_v9, 0.0 }
 0x125   :  { %v253_v11 = vadd.f32 %v252_v6, %v251_v10 }
 0x127   :  { %254 = vadd.xlane.f32.xlu2 %v253_v11 }
 0x19a   :  { %v255_v16 = vpop.xlane.xlu2 %254 }
 0x19b   :  { %v256_v17 = vrot.slane %v255_v16, 4 }
 0x19d   :  { %v257_v18 = vadd.f32 %v256_v17, %v255_v16 }
 0x19f   :  { %v258_v20 = vrot.slane %v257_v18, 2 }
 0x1a1   :  { %v259_v21 = vadd.f32 %v258_v20, %v257_v18 }
 0x1a3   :  { %v260_v23 = vrot.slane %v259_v21, 1 }
 0x1a5   :  { %v261_v24 = vadd.f32 %v260_v23, %v259_v21 }
 0x1a7   :  { %312 = vpush %v261_v24 }
 0x1a8   :  { %314 = vpush %v276_v25 }
 0x1d8   :  { %s313_s18 = spop %312 }
 0x1d9   :  { %s315_s19 = spop %314 }
 0x1da   :  { %s278_s20 = smul.f32 %s315_s19, %s313_s18 }
 0x1dc   :  { %280 = sst [smem:[#allocation8]] %s278_s20 }
 0x1dd   :  { %289 = dma.smem_to_hbm %s387_s21, 16, %s287_s17, [#allocation4]  }
 0x1de   :  { %379 = dma.done.wait [#allocation4], 16  }
 0x1df   :  { %380 = vsyncadd [#allocation4], 4294967280 }
 0x1e0   :  { %294 = sfence }
 0x1e1   :  { %295 = vsyncpa [#allocation4], 1 }
 0x1e2   :  { %296 = vsyncpa [#allocation5], 1 }
 0x1e3   :  { %297 = vsyncpa [#allocation7], 1 }

</bundles_post_ra>
